<compile_context>
chip_gen: v7x
topology: tpu7x:2x2x1
jax: 0.10.0
libtpu: 0.0.40
codegen_flags: <defaults>
</compile_context>

<pallas_src>
import functools

import numpy as np
import jax
import jax.numpy as jnp
from jax.experimental import pallas as pl
from jax.experimental.pallas import tpu as pltpu


def _fft_prompt_kernel(x_ref, bhr_ref, bhi_ref, bwr_ref, bwi_ref,
                       chr_ref, chi_ref, cwr_ref, cwi_ref, *rest,
                       g_slices, h, w, apply_factor):
    if apply_factor:
        fac_ref, o_ref = rest
    else:
        (o_ref,) = rest

    bf16 = jnp.bfloat16

    def mm(a, b):
        # bf16 operands, f32 accumulation -> one native MXU pass per matmul.
        return jnp.dot(a.astype(bf16), b.astype(bf16),
                       preferred_element_type=jnp.float32)

    # (G, H, W) block -> (G*H, W) stacked slab: pure leading-dim collapse in the
    # native memory order, no transpose / data movement.
    xs = x_ref[...].reshape(g_slices * h, w)

    # Forward DFT over rows of every slice: block-diagonal kron(I_G, B_H) with
    # the row fftshift folded into B_H.  x is real -> 2 matmuls.
    yr = mm(bhr_ref[...], xs)
    yi = mm(bhi_ref[...], xs)

    # Forward DFT over columns (shared W x W operator, col fftshift folded in).
    # Plain 4-matmul complex product (no Karatsuba cancellation).
    zr = mm(yr, bwr_ref[...]) - mm(yi, bwi_ref[...])
    zi = mm(yr, bwi_ref[...]) + mm(yi, bwr_ref[...])

    # Spectral factor (statically removed when it is identically 1).
    if apply_factor:
        f = fac_ref[...]
        zr = zr * f
        zi = zi * f

    # Inverse DFT over rows: block-diagonal kron(I_G, C_H), shift folded in.
    ur = mm(chr_ref[...], zr) - mm(chi_ref[...], zi)
    ui = mm(chr_ref[...], zi) + mm(chi_ref[...], zr)

    # Inverse DFT over columns; only the real part is needed -> 2 matmuls.
    real = mm(ur, cwr_ref[...]) - mm(ui, cwi_ref[...])

    o_ref[...] = jnp.abs(real).reshape(g_slices, h, w).astype(o_ref.dtype)


def fft_prompt(x, rate=0.25, prompt_type='highpass', out_dtype=None):
    assert prompt_type in ('highpass', 'lowpass')
    n, c, h, w = x.shape
    out_dtype = jnp.dtype(out_dtype) if out_dtype is not None else jnp.dtype(x.dtype)
    b = n * c

    # ---- slices per grid step -------------------------------------------------
    # Stack G slices along sublanes so the row-transform matmuls are ~256 rows
    # (fills the v6e/v7x 256-wide MXU; two passes on v5e) and the per-step
    # overhead is amortized.  Keep grid >= 2 when b > 1 so both v7x TensorCores
    # get work.  Fall back to the largest divisor of b to avoid any pad pass.
    rows_target = 256
    g_slices = max(1, min(b, rows_target // h)) if h < rows_target else 1
    if g_slices >= b and b > 1:
        g_slices = (b + 1) // 2
    while b % g_slices:
        # TODO(synk): replace the divisor fallback with masked boundary blocks
        # (cdiv grid) so awkward batch counts keep full-size blocks.
        g_slices -= 1
    grid = b // g_slices
    rows = g_slices * h

    # ---- DFT / IDFT operators with the spatial fftshifts folded in (host) ----
    kh = np.arange(h)
    kw = np.arange(w)
    f_h = np.exp(-2j * np.pi * np.outer(kh, kh) / h)     # forward row DFT
    f_w = np.exp(-2j * np.pi * np.outer(kw, kw) / w)     # forward col DFT
    g_h = np.conj(f_h) / h                               # inverse row DFT
    g_w = np.conj(f_w) / w                               # inverse col DFT
    sh, sw = h // 2, w // 2
    b_h = np.roll(f_h, sh, axis=0)        # fft2 rows  + fftshift rows
    b_w = np.roll(f_w, sw, axis=1)        # fft2 cols  + fftshift cols
    c_hm = np.roll(g_h, -sh, axis=1)      # fftshift rows + ifft2 rows
    c_wm = np.roll(g_w, -sw, axis=0)      # fftshift cols + ifft2 cols
    eye = np.eye(g_slices)
    b_hk = np.kron(eye, b_h)              # block-diag over the G stacked slices
    c_hk = np.kron(eye, c_hm)

    to_bf16 = lambda a: jnp.asarray(a, dtype=jnp.bfloat16)
    consts = [to_bf16(b_hk.real), to_bf16(b_hk.imag),
              to_bf16(b_w.real), to_bf16(b_w.imag),
              to_bf16(c_hk.real), to_bf16(c_hk.imag),
              to_bf16(c_wm.real), to_bf16(c_wm.imag)]

    # ---- spectral mask / factor, exactly as the PyTorch code builds it --------
    radio = int((h * w * rate) ** 0.5 // 2)
    mask = np.zeros((h, w), dtype=np.float32)
    mask[h // 2 - radio:h // 2 + radio, w // 2 - radio:w // 2 + radio] = 0.0
    factor = (1.0 - mask) if prompt_type == 'highpass' else mask
    apply_factor = not bool(np.all(factor == 1.0))

    extra_inputs, extra_specs = [], []
    if apply_factor:
        factor_stack = jnp.asarray(np.tile(factor, (g_slices, 1)), jnp.float32)
        extra_inputs = [factor_stack]
        extra_specs = [pl.BlockSpec((rows, w), lambda i: (0, 0))]

    # ---- BlockSpecs -----------------------------------------------------------
    const_bytes = 2 * (2 * rows * rows + 2 * w * w) * 2          # bf16 operands
    big_consts = const_bytes > (8 << 20)
    const_kw = dict(pipeline_mode=pl.Buffered(1)) if big_consts else {}
    const_specs = [pl.BlockSpec(m.shape, lambda i: (0, 0), **const_kw)
                   for m in consts]

    blk_bytes = g_slices * h * w * (x.dtype.itemsize + out_dtype.itemsize)
    fac_bytes = rows * w * 4 if apply_factor else 0
    need = (2 * blk_bytes + (1 if big_consts else 2) * const_bytes
            + 2 * fac_bytes + (4 << 20))
    vmem_limit = int(min(64 << 20, max(32 << 20, need)))   # stay <= v7x physical

    kernel = functools.partial(_fft_prompt_kernel, g_slices=g_slices, h=h, w=w,
                               apply_factor=apply_factor)

    xb = x.reshape(b, h, w)        # contiguous view of (N, C, H, W)
    out = pl.pallas_call(
        kernel,
        out_shape=jax.ShapeDtypeStruct((b, h, w), out_dtype),
        grid=(grid,),
        in_specs=[pl.BlockSpec((g_slices, h, w), lambda i: (i, 0, 0))]
                + const_specs + extra_specs,
        out_specs=pl.BlockSpec((g_slices, h, w), lambda i: (i, 0, 0)),
        compiler_params=pltpu.CompilerParams(
            dimension_semantics=("parallel",),
            vmem_limit_bytes=vmem_limit),
    )(xb, *consts, *extra_inputs)

    out = out.reshape(n, c, h, w)
    # torch.fft.fftshift defaults to ALL dims; applied twice it rolls the batch
    # and channel axes by 2*(dim//2) - identity for even N, C (skipped).
    shift_n, shift_c = (2 * (n // 2)) % n, (2 * (c // 2)) % c
    if shift_n or shift_c:
        out = jnp.roll(out, shift=(shift_n, shift_c), axis=(0, 1))
    return out


def fft_prompt_ref(x, rate=0.25, prompt_type='highpass'):
    """Plain-JAX reference mirroring the PyTorch forward (incl. all-dim fftshift)."""
    fft = jnp.fft.fft2(x)
    fft = jnp.fft.fftshift(fft)            # default: all dims, like torch
    h, w = x.shape[2], x.shape[3]
    radio = int((h * w * rate) ** 0.5 // 2)
    mask = jnp.zeros(x.shape, dtype=x.dtype)
    c_h, c_w = h // 2, w // 2
    mask = mask.at[:, :, c_h - radio:c_h + radio, c_w - radio:c_w + radio].set(0)
    if prompt_type == 'highpass':
        fft = fft * (1 - mask)
    else:
        fft = fft * mask
    shift = jnp.fft.fftshift(fft)
    inv = jnp.fft.ifft2(shift)
    return jnp.abs(inv.real)


if __name__ == "__main__":
    key = jax.random.PRNGKey(0)
    x = jax.random.normal(key, (2, 4, 16, 16), dtype=jnp.float32)

    out = jax.block_until_ready(fft_prompt(x, rate=0.25, prompt_type='highpass'))

    ref = fft_prompt_ref(x, rate=0.25, prompt_type='highpass')
    # Tolerance sized for bf16 MXU operands (f32 accumulation) through the two
    # DFT/IDFT transform pairs.
    np.testing.assert_allclose(np.asarray(out), np.asarray(ref),
                               atol=5e-2, rtol=5e-2)
    print("KERNEL_OK")
</pallas_src>

<mosaic_0001>
module attributes {stable_mosaic.version = 11 : i64} {
  func.func @_fft_prompt_kernel(%arg0: i32, %arg1: memref<4x16x16xf32, #tpu.memory_space<vmem>>, %arg2: memref<64x64xbf16, #tpu.memory_space<vmem>>, %arg3: memref<64x64xbf16, #tpu.memory_space<vmem>>, %arg4: memref<16x16xbf16, #tpu.memory_space<vmem>>, %arg5: memref<16x16xbf16, #tpu.memory_space<vmem>>, %arg6: memref<64x64xbf16, #tpu.memory_space<vmem>>, %arg7: memref<64x64xbf16, #tpu.memory_space<vmem>>, %arg8: memref<16x16xbf16, #tpu.memory_space<vmem>>, %arg9: memref<16x16xbf16, #tpu.memory_space<vmem>>, %arg10: memref<4x16x16xf32, #tpu.memory_space<vmem>>) attributes {dimension_semantics = [#tpu.dimension_semantics<parallel>], iteration_bounds = array<i64: 2>, scalar_prefetch = 0 : i64, scratch_operands = 0 : i64, tpu.core_type = #tpu.core_type<tc>, window_params = [{transform_indices = @transform_0, window_bounds = array<i64: 4, 16, 16>}, {pipeline_mode = #tpu.pipeline_mode<synchronous>, transform_indices = @transform_1, window_bounds = array<i64: 64, 64>}, {pipeline_mode = #tpu.pipeline_mode<synchronous>, transform_indices = @transform_2, window_bounds = array<i64: 64, 64>}, {pipeline_mode = #tpu.pipeline_mode<synchronous>, transform_indices = @transform_3, window_bounds = array<i64: 16, 16>}, {pipeline_mode = #tpu.pipeline_mode<synchronous>, transform_indices = @transform_4, window_bounds = array<i64: 16, 16>}, {pipeline_mode = #tpu.pipeline_mode<synchronous>, transform_indices = @transform_5, window_bounds = array<i64: 64, 64>}, {pipeline_mode = #tpu.pipeline_mode<synchronous>, transform_indices = @transform_6, window_bounds = array<i64: 64, 64>}, {pipeline_mode = #tpu.pipeline_mode<synchronous>, transform_indices = @transform_7, window_bounds = array<i64: 16, 16>}, {pipeline_mode = #tpu.pipeline_mode<synchronous>, transform_indices = @transform_8, window_bounds = array<i64: 16, 16>}, {transform_indices = @transform_9, window_bounds = array<i64: 4, 16, 16>}]} {
    %c0 = arith.constant 0 : index
    %c0_0 = arith.constant 0 : index
    %c0_1 = arith.constant 0 : index
    %0 = vector.load %arg1[%c0, %c0_0, %c0_1] : memref<4x16x16xf32, #tpu.memory_space<vmem>>, vector<4x16x16xf32>
    %1 = vector.shape_cast %0 : vector<4x16x16xf32> to vector<64x16xf32>
    %c0_2 = arith.constant 0 : index
    %c0_3 = arith.constant 0 : index
    %2 = vector.load %arg2[%c0_2, %c0_3] : memref<64x64xbf16, #tpu.memory_space<vmem>>, vector<64x64xbf16>
    %3 = arith.truncf %1 : vector<64x16xf32> to vector<64x16xbf16>
    %cst = arith.constant dense<0.000000e+00> : vector<64x16xf32>
    %4 = tpu.matmul %2, %3, %cst {dimension_numbers = #tpu.dot_dimension_numbers<[1], [0], [0], [1], [0, 0, 1, 1], [], []>} : vector<64x64xbf16>, vector<64x16xbf16>, vector<64x16xf32> -> vector<64x16xf32>
    %c0_4 = arith.constant 0 : index
    %c0_5 = arith.constant 0 : index
    %5 = vector.load %arg3[%c0_4, %c0_5] : memref<64x64xbf16, #tpu.memory_space<vmem>>, vector<64x64xbf16>
    %6 = arith.truncf %1 : vector<64x16xf32> to vector<64x16xbf16>
    %cst_6 = arith.constant dense<0.000000e+00> : vector<64x16xf32>
    %7 = tpu.matmul %5, %6, %cst_6 {dimension_numbers = #tpu.dot_dimension_numbers<[1], [0], [0], [1], [0, 0, 1, 1], [], []>} : vector<64x64xbf16>, vector<64x16xbf16>, vector<64x16xf32> -> vector<64x16xf32>
    %c0_7 = arith.constant 0 : index
    %c0_8 = arith.constant 0 : index
    %8 = vector.load %arg4[%c0_7, %c0_8] : memref<16x16xbf16, #tpu.memory_space<vmem>>, vector<16x16xbf16>
    %9 = arith.truncf %4 : vector<64x16xf32> to vector<64x16xbf16>
    %cst_9 = arith.constant dense<0.000000e+00> : vector<64x16xf32>
    %10 = tpu.matmul %9, %8, %cst_9 {dimension_numbers = #tpu.dot_dimension_numbers<[1], [0], [0], [1], [0, 0, 1, 1], [], []>} : vector<64x16xbf16>, vector<16x16xbf16>, vector<64x16xf32> -> vector<64x16xf32>
    %c0_10 = arith.constant 0 : index
    %c0_11 = arith.constant 0 : index
    %11 = vector.load %arg5[%c0_10, %c0_11] : memref<16x16xbf16, #tpu.memory_space<vmem>>, vector<16x16xbf16>
    %12 = arith.truncf %7 : vector<64x16xf32> to vector<64x16xbf16>
    %cst_12 = arith.constant dense<0.000000e+00> : vector<64x16xf32>
    %13 = tpu.matmul %12, %11, %cst_12 {dimension_numbers = #tpu.dot_dimension_numbers<[1], [0], [0], [1], [0, 0, 1, 1], [], []>} : vector<64x16xbf16>, vector<16x16xbf16>, vector<64x16xf32> -> vector<64x16xf32>
    %14 = arith.subf %10, %13 : vector<64x16xf32>
    %c0_13 = arith.constant 0 : index
    %c0_14 = arith.constant 0 : index
    %15 = vector.load %arg5[%c0_13, %c0_14] : memref<16x16xbf16, #tpu.memory_space<vmem>>, vector<16x16xbf16>
    %16 = arith.truncf %4 : vector<64x16xf32> to vector<64x16xbf16>
    %cst_15 = arith.constant dense<0.000000e+00> : vector<64x16xf32>
    %17 = tpu.matmul %16, %15, %cst_15 {dimension_numbers = #tpu.dot_dimension_numbers<[1], [0], [0], [1], [0, 0, 1, 1], [], []>} : vector<64x16xbf16>, vector<16x16xbf16>, vector<64x16xf32> -> vector<64x16xf32>
    %c0_16 = arith.constant 0 : index
    %c0_17 = arith.constant 0 : index
    %18 = vector.load %arg4[%c0_16, %c0_17] : memref<16x16xbf16, #tpu.memory_space<vmem>>, vector<16x16xbf16>
    %19 = arith.truncf %7 : vector<64x16xf32> to vector<64x16xbf16>
    %cst_18 = arith.constant dense<0.000000e+00> : vector<64x16xf32>
    %20 = tpu.matmul %19, %18, %cst_18 {dimension_numbers = #tpu.dot_dimension_numbers<[1], [0], [0], [1], [0, 0, 1, 1], [], []>} : vector<64x16xbf16>, vector<16x16xbf16>, vector<64x16xf32> -> vector<64x16xf32>
    %21 = arith.addf %17, %20 : vector<64x16xf32>
    %c0_19 = arith.constant 0 : index
    %c0_20 = arith.constant 0 : index
    %22 = vector.load %arg6[%c0_19, %c0_20] : memref<64x64xbf16, #tpu.memory_space<vmem>>, vector<64x64xbf16>
    %23 = arith.truncf %14 : vector<64x16xf32> to vector<64x16xbf16>
    %cst_21 = arith.constant dense<0.000000e+00> : vector<64x16xf32>
    %24 = tpu.matmul %22, %23, %cst_21 {dimension_numbers = #tpu.dot_dimension_numbers<[1], [0], [0], [1], [0, 0, 1, 1], [], []>} : vector<64x64xbf16>, vector<64x16xbf16>, vector<64x16xf32> -> vector<64x16xf32>
    %c0_22 = arith.constant 0 : index
    %c0_23 = arith.constant 0 : index
    %25 = vector.load %arg7[%c0_22, %c0_23] : memref<64x64xbf16, #tpu.memory_space<vmem>>, vector<64x64xbf16>
    %26 = arith.truncf %21 : vector<64x16xf32> to vector<64x16xbf16>
    %cst_24 = arith.constant dense<0.000000e+00> : vector<64x16xf32>
    %27 = tpu.matmul %25, %26, %cst_24 {dimension_numbers = #tpu.dot_dimension_numbers<[1], [0], [0], [1], [0, 0, 1, 1], [], []>} : vector<64x64xbf16>, vector<64x16xbf16>, vector<64x16xf32> -> vector<64x16xf32>
    %28 = arith.subf %24, %27 : vector<64x16xf32>
    %c0_25 = arith.constant 0 : index
    %c0_26 = arith.constant 0 : index
    %29 = vector.load %arg6[%c0_25, %c0_26] : memref<64x64xbf16, #tpu.memory_space<vmem>>, vector<64x64xbf16>
    %30 = arith.truncf %21 : vector<64x16xf32> to vector<64x16xbf16>
    %cst_27 = arith.constant dense<0.000000e+00> : vector<64x16xf32>
    %31 = tpu.matmul %29, %30, %cst_27 {dimension_numbers = #tpu.dot_dimension_numbers<[1], [0], [0], [1], [0, 0, 1, 1], [], []>} : vector<64x64xbf16>, vector<64x16xbf16>, vector<64x16xf32> -> vector<64x16xf32>
    %c0_28 = arith.constant 0 : index
    %c0_29 = arith.constant 0 : index
    %32 = vector.load %arg7[%c0_28, %c0_29] : memref<64x64xbf16, #tpu.memory_space<vmem>>, vector<64x64xbf16>
    %33 = arith.truncf %14 : vector<64x16xf32> to vector<64x16xbf16>
    %cst_30 = arith.constant dense<0.000000e+00> : vector<64x16xf32>
    %34 = tpu.matmul %32, %33, %cst_30 {dimension_numbers = #tpu.dot_dimension_numbers<[1], [0], [0], [1], [0, 0, 1, 1], [], []>} : vector<64x64xbf16>, vector<64x16xbf16>, vector<64x16xf32> -> vector<64x16xf32>
    %35 = arith.addf %31, %34 : vector<64x16xf32>
    %c0_31 = arith.constant 0 : index
    %c0_32 = arith.constant 0 : index
    %36 = vector.load %arg8[%c0_31, %c0_32] : memref<16x16xbf16, #tpu.memory_space<vmem>>, vector<16x16xbf16>
    %37 = arith.truncf %28 : vector<64x16xf32> to vector<64x16xbf16>
    %cst_33 = arith.constant dense<0.000000e+00> : vector<64x16xf32>
    %38 = tpu.matmul %37, %36, %cst_33 {dimension_numbers = #tpu.dot_dimension_numbers<[1], [0], [0], [1], [0, 0, 1, 1], [], []>} : vector<64x16xbf16>, vector<16x16xbf16>, vector<64x16xf32> -> vector<64x16xf32>
    %c0_34 = arith.constant 0 : index
    %c0_35 = arith.constant 0 : index
    %39 = vector.load %arg9[%c0_34, %c0_35] : memref<16x16xbf16, #tpu.memory_space<vmem>>, vector<16x16xbf16>
    %40 = arith.truncf %35 : vector<64x16xf32> to vector<64x16xbf16>
    %cst_36 = arith.constant dense<0.000000e+00> : vector<64x16xf32>
    %41 = tpu.matmul %40, %39, %cst_36 {dimension_numbers = #tpu.dot_dimension_numbers<[1], [0], [0], [1], [0, 0, 1, 1], [], []>} : vector<64x16xbf16>, vector<16x16xbf16>, vector<64x16xf32> -> vector<64x16xf32>
    %42 = arith.subf %38, %41 : vector<64x16xf32>
    %43 = math.absf %42 : vector<64x16xf32>
    %44 = vector.shape_cast %43 : vector<64x16xf32> to vector<4x16x16xf32>
    %c0_37 = arith.constant 0 : index
    %c0_38 = arith.constant 0 : index
    %c0_39 = arith.constant 0 : index
    %45 = vector.load %arg10[%c0_37, %c0_38, %c0_39] : memref<4x16x16xf32, #tpu.memory_space<vmem>>, vector<4x16x16xf32>
    tpu.vector_store %arg10[%c0_37, %c0_38, %c0_39], %44 {strides = array<i32>} : memref<4x16x16xf32, #tpu.memory_space<vmem>>, vector<4x16x16xf32>,
    return
  }
  func.func @transform_0(%arg0: i32) -> (i32, i32, i32) {
    %c0_i32 = arith.constant 0 : i32
    %c0_i32_0 = arith.constant 0 : i32
    %c0_i32_1 = arith.constant 0 : i32
    return %arg0, %c0_i32, %c0_i32_0 : i32, i32, i32
  }
  func.func @transform_1(%arg0: i32) -> (i32, i32) {
    %c0_i32 = arith.constant 0 : i32
    %c0_i32_0 = arith.constant 0 : i32
    %c0_i32_1 = arith.constant 0 : i32
    return %c0_i32, %c0_i32_0 : i32, i32
  }
  func.func @transform_2(%arg0: i32) -> (i32, i32) {
    %c0_i32 = arith.constant 0 : i32
    %c0_i32_0 = arith.constant 0 : i32
    %c0_i32_1 = arith.constant 0 : i32
    return %c0_i32, %c0_i32_0 : i32, i32
  }
  func.func @transform_3(%arg0: i32) -> (i32, i32) {
    %c0_i32 = arith.constant 0 : i32
    %c0_i32_0 = arith.constant 0 : i32
    %c0_i32_1 = arith.constant 0 : i32
    return %c0_i32, %c0_i32_0 : i32, i32
  }
  func.func @transform_4(%arg0: i32) -> (i32, i32) {
    %c0_i32 = arith.constant 0 : i32
    %c0_i32_0 = arith.constant 0 : i32
    %c0_i32_1 = arith.constant 0 : i32
    return %c0_i32, %c0_i32_0 : i32, i32
  }
  func.func @transform_5(%arg0: i32) -> (i32, i32) {
    %c0_i32 = arith.constant 0 : i32
    %c0_i32_0 = arith.constant 0 : i32
    %c0_i32_1 = arith.constant 0 : i32
    return %c0_i32, %c0_i32_0 : i32, i32
  }
  func.func @transform_6(%arg0: i32) -> (i32, i32) {
    %c0_i32 = arith.constant 0 : i32
    %c0_i32_0 = arith.constant 0 : i32
    %c0_i32_1 = arith.constant 0 : i32
    return %c0_i32, %c0_i32_0 : i32, i32
  }
  func.func @transform_7(%arg0: i32) -> (i32, i32) {
    %c0_i32 = arith.constant 0 : i32
    %c0_i32_0 = arith.constant 0 : i32
    %c0_i32_1 = arith.constant 0 : i32
    return %c0_i32, %c0_i32_0 : i32, i32
  }
  func.func @transform_8(%arg0: i32) -> (i32, i32) {
    %c0_i32 = arith.constant 0 : i32
    %c0_i32_0 = arith.constant 0 : i32
    %c0_i32_1 = arith.constant 0 : i32
    return %c0_i32, %c0_i32_0 : i32, i32
  }
  func.func @transform_9(%arg0: i32) -> (i32, i32, i32) {
    %c0_i32 = arith.constant 0 : i32
    %c0_i32_0 = arith.constant 0 : i32
    %c0_i32_1 = arith.constant 0 : i32
    return %arg0, %c0_i32, %c0_i32_0 : i32, i32, i32
  }
}

</mosaic_0001>

<bundles_post_ra>
// kernel: tpu_custom_call.1
= control target key start
LH: loop header
LB: loop body
LE: loop exit
PB: predicated region body
PF: predicated region fallthrough
CT: control target
= control target key end

     0   :  { %s2835_s0 = inlined_call_operand.hbm [shape: f32[8,16,16], index: 0, kind: input, shape index: {}]   ;;  %s2836_s1 = inlined_call_operand.hbm [shape: bf16[64,64], index: 1, kind: input, shape index: {}]   ;;  %s2837_s2 = inlined_call_operand.hbm [shape: bf16[64,64], index: 2, kind: input, shape index: {}]   ;;  %s2838_s3 = inlined_call_operand.vmem [shape: bf16[16,16], index: 3, kind: input, shape index: {}]   ;;  %s2839_s4 = inlined_call_operand.hbm [shape: bf16[16,16], index: 4, kind: input, shape index: {}]   ;;  %s2840_s5 = inlined_call_operand.hbm [shape: bf16[64,64], index: 5, kind: input, shape index: {}]   ;;  %s2841_s6 = inlined_call_operand.hbm [shape: bf16[64,64], index: 6, kind: input, shape index: {}]   ;;  %s2842_s7 = inlined_call_operand.vmem [shape: bf16[16,16], index: 7, kind: input, shape index: {}]   ;;  %s2843_s8 = inlined_call_operand.vmem [shape: bf16[16,16], index: 8, kind: input, shape index: {}]   ;;  %s2844_s9 = inlined_call_operand.hbm [shape: f32[8,16,16], index: 9, kind: output, shape index: {}]  }
   0x1   :  { %2849 = sst [smem:[#allocation19_spill]] %s2836_s1 }
   0x2   :  { %2850 = sst [smem:[#allocation20_spill]] %s2844_s9 }
   0x3   :  { %14 = vsyncpa [#allocation3], 0 }
   0x4   :  { %16 = vsyncpa [#allocation3 + $0x1], 0 }
   0x5   :  { %17 = vsyncpa [#allocation6], 0 }
   0x6   :  { %18 = vsyncpa [#allocation9], 0 }
   0x7   :  { %19 = vsyncpa [#allocation12], 0 }
   0x8   :  { %20 = vsyncpa [#allocation4], 0 }
   0x9   :  { %22 = vsyncpa [#allocation4 + $0x1], 0  ;;  %s2446_s30 = smov 0   ;;  %s2448_s10 = smov 0  }
   0xa   :  { %s2450_s11 = smov 0   ;;  %s2452_s12 = smov 0  }
   0xb LB: > { %s2383_s13 = smov [#allocation5]   ;;  %s2467_s15 = sadd.s32 4294967295, %s2381_s12   ;;  %s2381_s12 = sphi %s2452_s12, %s2874_s12   ;;  %s2377_s11 = sphi %s2450_s11, %s2873_s11   ;;  %s2373_s10 = sphi %s2448_s10, %s2872_s10   ;;  %s2369_s30 = sphi %s2446_s30, %s2871_s30  }
   0xc   : > { %s265_s14 = sshll.u32 %s2383_s13, 4  ;;  %p1663_p0 = scmp.ge.s32.totalorder %s2381_s12, 1  ;;  %s2472_s14 = int_to_ptr.vmem [resolvable:$true] %s265_s14 }
   0xd   : > { %p2846_p1 = scmp.eq.s32.totalorder %s2467_s15, 0  ;;  %p253_p2 = scmp.lt.s32.totalorder %s2381_s12, 3 }
   0xe   : > { %s2384_s17 = smov [#allocation8]   ;;  %s2385_s20 = smov [#allocation7]  }
   0xf   : > { %p2474_p3 = pnand %p1663_p0, %p253_p2  ;;  %s294_s18 = sshll.u32 %s2384_s17, 4  ;;  %s2487_s18 = int_to_ptr.vmem [resolvable:$true] %s294_s18 }
  0x10   : > { %s278_s21 = sshll.u32 %s2385_s20, 4  ;;  %s2853_s1 = sld [smem:[#allocation19_spill]]  ;;  %s2489_s21 = int_to_ptr.vmem [resolvable:$true] %s278_s21 }
  0x11   : > { %s2851_s16 = scalar_select %p2474_p3, 1, 0 }
  0x12   : > { %p2034_p5 = pneg %p2474_p3 }
  0x14   : > { %p2483_p6 = pnand %p2034_p5, %p2846_p1 }
  0x16   : > { %s2133_s24 = scalar_lea.hbm %s2853_s1, 512  ;;  %p2499_p8 = pneg %p2483_p6 }
  0x17   : > { %p2134_p7 = scmp.ne.s32.totalorder %s2853_s1, %s2133_s24  ;;  %p2140_p11 = scmp.lt.u32.totalorder %s2133_s24, %s2853_s1 }
  0x19   : > { %p2136_p9 = pnand %p2499_p8, %p2134_p7 }
  0x1b   : > { %p2137_p10 = pneg %p2136_p9 }
  0x1d   : > { %p2142_p12 = pnand %p2140_p11, %p2137_p10 }
  0x1f   : > { %2145 = shalt.err (!%p2142_p12)
}
  0x20   : > { %s2146_s13 = scalar_lea.vmem %s2472_s14, 512  ;;  %p2154_p5 = scmp.lt.s32.totalorder %s2472_s14, %s2472_s14 }
  0x21   : > { %p2147_p13 = scmp.ne.s32.totalorder %s2472_s14, %s2146_s13  ;;  %p2155_p4 = scmp.lt.s32.totalorder %s2146_s13, %s2146_s13 }
  0x23   : > { %p2149_p0 = pnand %p2147_p13, %p2499_p8  ;;  %p2156_p7 = por %p2155_p4, %p2154_p5 }
  0x25   : > { %p2150_p2 = pneg %p2149_p0 }
  0x27   : > { %p2157_p9 = pnand %p2156_p7, %p2150_p2 }
  0x29   : > { %2160 = shalt.err (!%p2157_p9)
}
  0x2a   : > { %s2386_s17 = smov 64   ;;  %s2387_s20 = smov 4  }
  0x2b   : > { %2037 = dma.hbm_to_vmem [thread:$0]  (!%p2483_p6), %s2853_s1, 512, %s2472_s14, [#allocation6], %s2386_s17, %s2386_s17, %s2387_s20  }
  0x2c   : > { %s2161_s26 = scalar_lea.hbm %s2839_s4, 128 }
  0x2d   : > { %p2162_p4 = scmp.ne.s32.totalorder %s2839_s4, %s2161_s26  ;;  %p2168_p12 = scmp.lt.u32.totalorder %s2161_s26, %s2839_s4 }
  0x2f   : > { %p2164_p10 = pnand %p2162_p4, %p2499_p8 }
  0x31   : > { %p2165_p11 = pneg %p2164_p10 }
  0x33   : > { %p2170_p13 = pnand %p2168_p12, %p2165_p11 }
  0x35   : > { %2173 = shalt.err (!%p2170_p13)
}
  0x36   : > { %s2174_s14 = scalar_lea.vmem %s2487_s18, 128  ;;  %p2182_p7 = scmp.lt.s32.totalorder %s2487_s18, %s2487_s18 }
  0x37   : > { %p2175_p0 = scmp.ne.s32.totalorder %s2487_s18, %s2174_s14  ;;  %p2183_p9 = scmp.lt.s32.totalorder %s2174_s14, %s2174_s14 }
  0x39   : > { %p2177_p2 = pnand %p2175_p0, %p2499_p8  ;;  %p2184_p4 = por %p2183_p9, %p2182_p7 }
  0x3b   : > { %p2178_p5 = pneg %p2177_p2 }
  0x3d   : > { %p2185_p10 = pnand %p2184_p4, %p2178_p5 }
  0x3f   : > { %2188 = shalt.err (!%p2185_p10)
}
  0x40   : > { %2043 = dma.hbm_to_vmem [thread:$0]  (!%p2483_p6), %s2839_s4, 128, %s2487_s18, [#allocation9], %s2386_s17, %s2386_s17, %s2387_s20  }
  0x41   : > { %s2189_s25 = scalar_lea.hbm %s2837_s2, 512 }
  0x42   : > { %p2190_p11 = scmp.ne.s32.totalorder %s2837_s2, %s2189_s25  ;;  %p2196_p0 = scmp.lt.u32.totalorder %s2189_s25, %s2837_s2 }
  0x44   : > { %p2192_p12 = pnand %p2190_p11, %p2499_p8 }
  0x46   : > { %p2193_p13 = pneg %p2192_p12 }
  0x48   : > { %p2198_p2 = pnand %p2196_p0, %p2193_p13 }
  0x4a   : > { %2201 = shalt.err (!%p2198_p2)
}
  0x4b   : > { %s2202_s18 = scalar_lea.vmem %s2489_s21, 512  ;;  %p2210_p4 = scmp.lt.s32.totalorder %s2489_s21, %s2489_s21 }
  0x4c   : > { %p2203_p5 = scmp.ne.s32.totalorder %s2489_s21, %s2202_s18  ;;  %p2211_p10 = scmp.lt.s32.totalorder %s2202_s18, %s2202_s18 }
  0x4e   : > { %p2205_p7 = pnand %p2203_p5, %p2499_p8  ;;  %p2212_p11 = por %p2211_p10, %p2210_p4 }
  0x50   : > { %p2206_p9 = pneg %p2205_p7 }
  0x52   : > { %p2213_p12 = pnand %p2212_p11, %p2206_p9 }
  0x54   : > { %2216 = shalt.err (!%p2213_p12)
}
  0x55   : > { %2040 = dma.hbm_to_vmem [thread:$0]  (!%p2483_p6), %s2837_s2, 512, %s2489_s21, [#allocation6], %s2386_s17, %s2386_s17, %s2387_s20  }
  0x56   : > { %s2388_s22 = smov [#allocation10]   ;;  %s2389_s24 = smov [#allocation11]  }
  0x57   : > { %s307_s23 = sshll.u32 %s2388_s22, 4  ;;  %s320_s25 = sshll.u32 %s2389_s24, 4  ;;  %s308_s23 = int_to_ptr.vmem [resolvable:$true] %s307_s23  ;;  %s321_s25 = int_to_ptr.vmem [resolvable:$true] %s320_s25 }
  0x58   : > { %s2217_s29 = scalar_lea.hbm %s2840_s5, 512 }
  0x59   : > { %p2218_p13 = scmp.ne.s32.totalorder %s2840_s5, %s2217_s29  ;;  %p2224_p5 = scmp.lt.u32.totalorder %s2217_s29, %s2840_s5 }
  0x5b   : > { %p2220_p0 = pnand %p2218_p13, %p2499_p8 }
  0x5d   : > { %p2221_p2 = pneg %p2220_p0 }
  0x5f   : > { %p2226_p7 = pnand %p2224_p5, %p2221_p2 }
  0x61   : > { %2229 = shalt.err (!%p2226_p7)
}
  0x62   : > { %s2230_s21 = scalar_lea.vmem %s308_s23, 512  ;;  %p2238_p11 = scmp.lt.s32.totalorder %s308_s23, %s308_s23 }
  0x63   : > { %p2231_p9 = scmp.ne.s32.totalorder %s308_s23, %s2230_s21  ;;  %p2239_p12 = scmp.lt.s32.totalorder %s2230_s21, %s2230_s21 }
  0x65   : > { %p2233_p4 = pnand %p2231_p9, %p2499_p8  ;;  %p2240_p1 = por %p2239_p12, %p2238_p11 }
  0x67   : > { %p2234_p10 = pneg %p2233_p4 }
  0x69   : > { %p2241_p3 = pnand %p2240_p1, %p2234_p10 }
  0x6b   : > { %2244 = shalt.err (!%p2241_p3)
}
  0x6c   : > { %2046 = dma.hbm_to_vmem [thread:$0]  (!%p2483_p6), %s2840_s5, 512, %s308_s23, [#allocation9], %s2386_s17, %s2386_s17, %s2387_s20  }
  0x6d   : > { %s2245_s26 = scalar_lea.hbm %s2841_s6, 512 }
  0x6e   : > { %p2246_p1 = scmp.ne.s32.totalorder %s2841_s6, %s2245_s26  ;;  %p2252_p0 = scmp.lt.u32.totalorder %s2245_s26, %s2841_s6 }
  0x70   : > { %p2248_p3 = pnand %p2246_p1, %p2499_p8 }
  0x72   : > { %p2249_p13 = pneg %p2248_p3 }
  0x74   : > { %p2254_p2 = pnand %p2252_p0, %p2249_p13 }
  0x76   : > { %2257 = shalt.err (!%p2254_p2)
}
  0x77   : > { %s2258_s14 = scalar_lea.vmem %s321_s25, 512  ;;  %p2266_p4 = scmp.lt.s32.totalorder %s321_s25, %s321_s25 }
  0x78   : > { %p2259_p5 = scmp.ne.s32.totalorder %s321_s25, %s2258_s14  ;;  %p2267_p10 = scmp.lt.s32.totalorder %s2258_s14, %s2258_s14 }
  0x7a   : > { %p2261_p7 = pnand %p2259_p5, %p2499_p8  ;;  %p2268_p11 = por %p2267_p10, %p2266_p4 }
  0x7c   : > { %p2262_p9 = pneg %p2261_p7 }
  0x7e   : > { %p2269_p12 = pnand %p2268_p11, %p2262_p9 }
  0x80   : > { %2272 = shalt.err (!%p2269_p12)
}
  0x81   : > { %2049 = dma.hbm_to_vmem [thread:$0]  (!%p2483_p6), %s2841_s6, 512, %s321_s25, [#allocation12], %s2386_s17, %s2386_s17, %s2387_s20  }
  0x82   : > { %s1662_s19 = sadd.s32 4294967294, %s2381_s12   ;;  %s2619_s27 = sadd.s32 1, %s2381_s12  }
  0x83   : > { %s35_s1 = sadd.s32 1, %s2377_s11  ;;  %s32_s9 = ssub.s32 %s2381_s12, %s2619_s27 }
  0x84   : > { %p42_p8 = scmp.ne.s32.totalorder %s2377_s11, %s2373_s10  ;;  %p33_p1 = scmp.eq.s32.totalorder %s32_s9, 0 }
  0x85   : > { %p43_p3 = scmp.eq.s32.totalorder %s2381_s12, 0  ;;  %p48_p13 = scmp.ne.s32.totalorder %s2373_s10, %s2369_s30 }
  0x86   : > { %p240_p0 = scmp.eq.s32.totalorder %s2467_s15, 1  ;;  %p2855_p5 = scmp.eq.s32.totalorder %s2467_s15, 0 }
  0x87   : > { %s2631_s22 = scalar_select %p33_p1, %s2377_s11, %s35_s1  }
  0x88   : > { %p44_p2 = por %p43_p3, %p42_p8  ;;  %p2635_p7 = por %p2855_p5, %p48_p13 }
  0x89   : > { %p2639_p6 = por %p240_p0, %p42_p8  ;;  %p246_p9 = scmp.eq.s32.totalorder %s1662_s19, 1 }
  0x8a   : > { %p2063_p4 = scmp.lt.s32.totalorder %s2381_s12, 2  ;;  %s340_s20 = sand.u32 1, %s2377_s11  }
  0x8b   : > { %s2857_s17 = scalar_select %p2639_p6, 1, 0 }
  0x8c   : > { %p2645_p10 = por %p246_p9, %p48_p13  ;;  %s1670_s26 = sshll.u32 %s340_s20, 6 }
  0x8d   : > { %s1757_s28 = sshll.u32 %s2381_s12, 10  ;;  %s344_s14 = scalar_lea.vmem [#allocation2], %s1670_s26 }
  0x8e   : > { %s2858_s25 = scalar_select %p2645_p10, 1, 0 }
  0x8f   : > { %s2653_s18 = scalar_lea.hbm %s2835_s0, %s1757_s28  ;;  %s352_s23 = sshll.u32 %s344_s14, 4  ;;  %s2659_s23 = int_to_ptr.vmem [resolvable:$true] %s352_s23 }
  0x90   : > { %p2655_p11 = pnand %p2063_p4, %p44_p2  ;;  %s2661_s19 = scalar_lea.sflag [#allocation3], %s340_s20 }
  0x91   : > { %s2273_s1 = scalar_lea.hbm %s2653_s18, 1024  ;;  %s2278_s28 = scalar_lea.hbm %s2835_s0, 2048 }
  0x92   : > { %p2274_p12 = scmp.ne.s32.totalorder %s2653_s18, %s2273_s1  ;;  %p2275_p8 = pneg %p2655_p11 }
  0x93   : > { %p2279_p13 = scmp.lt.u32.totalorder %s2653_s18, %s2835_s0  ;;  %p2280_p0 = scmp.lt.u32.totalorder %s2278_s28, %s2273_s1 }
  0x94   : > { %p2276_p1 = pnand %p2275_p8, %p2274_p12  ;;  %p2282_p5 = scmp.lt.u32.totalorder %s2273_s1, %s2653_s18 }
  0x95   : > { %p2281_p2 = por %p2280_p0, %p2279_p13 }
  0x96   : > { %p2277_p3 = pneg %p2276_p1 }
  0x97   : > { %p2283_p9 = por %p2282_p5, %p2281_p2 }
  0x99   : > { %p2284_p4 = pnand %p2283_p9, %p2277_p3 }
  0x9b   : > { %2287 = shalt.err (!%p2284_p4)
}
  0x9c   : > { %s2288_s20 = scalar_lea.vmem %s2659_s23, 1024  ;;  %s2390_s14 = smov [#allocation2]  }
  0x9d   : > { %p2289_p12 = scmp.ne.s32.totalorder %s2659_s23, %s2288_s20  ;;  %s2293_s9 = sshll.u32 %s2390_s14, 4  ;;  %s2294_s9 = int_to_ptr.vmem [resolvable:$false] %s2293_s9 }
  0x9e   : > { %s2295_s26 = scalar_lea.vmem %s2294_s9, 2048  ;;  %p2296_p6 = scmp.lt.s32.totalorder %s2659_s23, %s2294_s9 }
  0x9f   : > { %p2291_p1 = pnand %p2289_p12, %p2275_p8  ;;  %p2297_p13 = scmp.lt.s32.totalorder %s2295_s26, %s2288_s20 }
  0xa1   : > { %p2292_p10 = pneg %p2291_p1  ;;  %p2298_p0 = por %p2297_p13, %p2296_p6 }
  0xa3   : > { %p2299_p2 = pnand %p2298_p0, %p2292_p10 }
  0xa5   : > { %2302 = shalt.err (!%p2299_p2)
}
  0xa6   : > { %s2391_s1 = smov 128   ;;  %s2392_s28 = smov 8  }
  0xa7   : > { %2053 = dma.hbm_to_vmem [thread:$0]  (!%p2655_p11), %s2653_s18, 1024, %s2659_s23, %s2661_s19, %s2391_s1, %s2391_s1, %s2392_s28  }
  0xa8   : > { %p2860_p8 = scmp.ne.s32.totalorder %s2851_s16, 0 }
  0xa9   : > { %s2692_s29 = sand.u32 (!%p2860_p8), 1, %s2373_s10  }
  0xaa   : > { %364 = sbr.rel (%p2860_p8) target bundleno = 1168 (0x490), region = 56  ;;  %s1675_s13 = sshll.u32 (!%p2860_p8), %s2692_s29, 6 }
  0xab   : > { %s367_s20 = scalar_lea.sflag (!%p2860_p8), [#allocation3], %s2692_s29  ;;  %s370_s14 = scalar_lea.vmem (!%p2860_p8), [#allocation2], %s1675_s13 }
  0xb1   : > { %2348 = dma.done.wait (%p2635_p7), %s367_s20, 1024  }
  0xb2   : > { %2350 = vsyncadd (%p2635_p7), %s367_s20, 4294966272  ;;  %p2861_p6 = scmp.eq.s32.totalorder %s2467_s15, 0 }
  0xb4   : > { %2352 = dma.done.wait (%p2861_p6), [#allocation6], 1024   ;;  %p2862_p10 = pmov %p2861_p6 }
  0xb5   : > { %p2863_p11 = pmov %p2861_p6 }
  0xb6   : > { %2354 = vsyncadd (%p2862_p10), [#allocation6], 4294966272 }
  0xb7   : > { %2356 = dma.done.wait (%p2863_p11), [#allocation9], 640   ;;  %p2864_p3 = pmov %p2861_p6 }
  0xb9   : > { %2358 = vsyncadd (%p2864_p3), [#allocation9], 4294966656  ;;  %p2865_p5 = pmov %p2864_p3 }
  0xba   : > { %p2866_p9 = pmov %p2864_p3 }
  0xbb   : > { %2360 = dma.done.wait (%p2865_p5), [#allocation12], 512  }
  0xbc   : > { %2362 = vsyncadd (%p2866_p9), [#allocation12], 4294966784  ;;  %v428_v0 = vld [vmem:[%s370_s14] sm:$0xff]  ;;  %v429_v1 = vld [vmem:[%s370_s14 + $0x8] sm:$0xff]  ;;  %vm468_vm0 = vcmask 523264   ;;  %vm663_vm1 = vcmask 130048  }
  0xbd   : > { %v430_v2 = vld [vmem:[%s370_s14 + $0x10] sm:$0xff]  ;;  %v444_v3 = vpack.c.bf16 %v429_v1, %v428_v0  ;;  %v431_v4 = vld [vmem:[%s370_s14 + $0x18] sm:$0xff]  ;;  %v432_v6 = vld [vmem:[%s370_s14 + $0x20] sm:$0xff]  ;;  %s424_s9 = scalar_lea.vmem [#allocation13], %s1675_s13  ;;  %s1759_s26 = sshll.u32 %s2467_s15, 10 }
  0xbe   : > { %v445_v5 = vpack.c.bf16 %v431_v4, %v430_v2  ;;  %v433_v7 = vld [vmem:[%s370_s14 + $0x28] sm:$0xff]  ;;  %v2113_v8 = vld [vmem:[#allocation5] sm:$0xff]   ;;  %v434_v11 = vld [vmem:[%s370_s14 + $0x30] sm:$0xff]  ;;  %s1541_s1 = sshll.u32 %s424_s9, 4  ;;  %s2867_s20 = sld [smem:[#allocation20_spill]]  ;;  %s2788_s1 = int_to_ptr.vmem [resolvable:$true] %s1541_s1 }
  0xbf   : > { %1838 = vmatprep.subr.bf16.mxu0 %v444_v3  ;;  %1854 = vmatprep.subr.bf16.mxu1 %v444_v3  ;;  %v2114_v9 = vld [vmem:[#allocation7] sm:$0xff]   ;;  %v446_v10 = vpack.c.bf16 %v433_v7, %v432_v6  ;;  %v435_v12 = vld [vmem:[%s370_s14 + $0x38] sm:$0xff]  ;;  %v2115_v15 = vld [vmem:[#allocation5 + $0x8] sm:$0xff]   ;;  %s1527_s15 = scalar_lea.sflag [#allocation4], %s2692_s29  ;;  %s2303_s16 = scalar_lea.vmem %s2788_s1, 1024 }
  0xc0   : > { %1839 = vmatpush3.bf16.msra.mxu0 %v444_v3  ;;  %1855 = vmatpush3.bf16.msra.mxu1 %v444_v3  ;;  %v447_v13 = vpack.c.bf16 %v435_v12, %v434_v11  ;;  %v2121_v14 = vld [vmem:[%s2838_s3] sm:$0xff]   ;;  %v2116_v16 = vld [vmem:[#allocation7 + $0x8] sm:$0xff]   ;;  %v2117_v17 = vld [vmem:[#allocation5 + $0x10] sm:$0xff]   ;;  %p2304_p7 = scmp.ne.s32.totalorder %s2788_s1, %s2303_s16  ;;  %p2868_p4 = scmp.ne.s32.totalorder %s2857_s17, 0 }
  0xc1   : > { %1840 = vmatprep.subr.bf16.mxu0 %v445_v5  ;;  %1856 = vmatprep.subr.bf16.mxu1 %v445_v5  ;;  %v2118_v18 = vld [vmem:[#allocation7 + $0x10] sm:$0xff]   ;;  %v2119_v19 = vld [vmem:[#allocation5 + $0x18] sm:$0xff]   ;;  %v2122_v21 = vld [vmem:[#allocation8] sm:$0xff]   ;;  %s2393_s24 = smov [#allocation13]  }
  0xc2   : > { %1846 = vmatprep.mubr.msk.bf16.mxu0 %vm468_vm0, %v2113_v8  ;;  %1862 = vmatprep.mubr.msk.bf16.mxu1 %vm468_vm0, %v2114_v9  ;;  %v2120_v20 = vld [vmem:[#allocation7 + $0x18] sm:$0xff]   ;;  %v2741_v46 = vld [vmem:[#allocation10] sm:$0xff]   ;;  %v2124_v12 = vld [vmem:[#allocation10 + $0x8] sm:$0xff]   ;;  %p2305_p12 = pnand %p2304_p7, %p2868_p4  ;;  %s2307_s18 = sshll.u32 %s2393_s24, 4  ;;  %s2308_s18 = int_to_ptr.vmem [resolvable:$false] %s2307_s18 }
  0xc3   : > { %v2125_v47 = vld [vmem:[#allocation11] sm:$0xff]   ;;  %s2309_s23 = scalar_lea.vmem %s2308_s18, 2048  ;;  %p2310_p13 = scmp.lt.s32.totalorder %s2788_s1, %s2308_s18 }
  0xc4   : > { %1841 = vmatpush3.bf16.msra.mxu0 %v445_v5  ;;  %1857 = vmatpush3.bf16.msra.mxu1 %v445_v5  ;;  %s2786_s14 = scalar_lea.hbm %s2867_s20, %s1759_s26  ;;  %p2306_p1 = pneg %p2305_p12 }
  0xc5   : > { %1842 = vmatprep.subr.bf16.mxu0 %v446_v10  ;;  %1858 = vmatprep.subr.bf16.mxu1 %v446_v10  ;;  %p2311_p0 = scmp.lt.s32.totalorder %s2309_s23, %s2303_s16 }
  0xc7   : > { %p2312_p2 = por %p2311_p0, %p2310_p13 }
  0xc8   : > { %1843 = vmatpush3.bf16.msra.mxu0 %v446_v10  ;;  %1859 = vmatpush3.bf16.msra.mxu1 %v446_v10 }
  0xc9   : > { %1844 = vmatprep.subr.bf16.mxu0 %v447_v13  ;;  %1860 = vmatprep.subr.bf16.mxu1 %v447_v13  ;;  %p2313_p8 = pnand %p2312_p2, %p2306_p1 }
  0xcc   : > { %1845 = vmatpush3.bf16.msra.mxu0 %v447_v13  ;;  %1861 = vmatpush3.bf16.msra.mxu1 %v447_v13  ;;  %v2126_v13 = vld [vmem:[#allocation11 + $0x8] sm:$0xff]  }
  0xcd   : > { %1870 = vmatprep.subr.bf16.mxu0 %v2121_v14  ;;  %1880 = vmatprep.subr.bf16.mxu1 %v2122_v21 }
  0xcf   : > { %1847 = vmatmul.mubr.msk.bf16.vlgmr.msra.gmra.mrb[0].mxu0 %vm468_vm0, %v2115_v15  ;;  %1863 = vmatmul.mubr.msk.bf16.vlgmr.msra.gmra.mrb[0].mxu1 %vm468_vm0, %v2116_v16  ;;  %v2129_v15 = vld [vmem:[#allocation11 + $0x10] sm:$0xff]   ;;  %v2128_v16 = vld [vmem:[#allocation10 + $0x18] sm:$0xff]  }
  0xd0   : > { %1850 = vmatprep.mubr.msk.bf16.mxu0 %vm468_vm0, %v2117_v17  ;;  %1866 = vmatprep.mubr.msk.bf16.mxu1 %vm468_vm0, %v2118_v18  ;;  %v2130_v17 = vld [vmem:[#allocation11 + $0x18] sm:$0xff]  }
  0xd1   : > { %1871 = vmatpush3.bf16.msra.mxu0 %v2121_v14  ;;  %1881 = vmatpush3.bf16.msra.mxu1 %v2122_v21 }
  0xd2   : > { %1890 = vmatprep.subr.bf16.mxu0 %v2121_v14 }
  0xd7   : > { %1851 = vmatmul.mubr.msk.bf16.gmra.mrb[4].mxu0 %vm468_vm0, %v2119_v19  ;;  %1867 = vmatmul.mubr.msk.bf16.gmra.mrb[4].mxu1 %vm468_vm0, %v2120_v20 }
 0x1a2   : > { %v1848_v22 = vpop.f32.mrb[0].mxu0  ;;  %v1864_v23 = vpop.f32.mrb[0].mxu1 }
 0x1a3   : > { %v515_v24 = vpop.f32.mrb[1].mxu0  ;;  %v620_v25 = vpop.f32.mrb[1].mxu1 }
 0x1a4   : > { %v1849_v26 = vpop.f32.mrb[2].mxu0  ;;  %v1865_v27 = vpop.f32.mrb[2].mxu1 }
 0x1a5   : > { %v654_v28 = vpack.c.bf16 %v1849_v26, %v1848_v22  ;;  %v744_v29 = vpack.c.bf16 %v1865_v27, %v1864_v23  ;;  %v518_v30 = vpop.f32.mrb[3].mxu0  ;;  %v623_v31 = vpop.f32.mrb[3].mxu1 }
 0x1a6   : > { %v653_v32 = vpack.c.bf16 %v518_v30, %v515_v24  ;;  %v743_v33 = vpack.c.bf16 %v623_v31, %v620_v25  ;;  %v2131_v30 = vld [vmem:[%s2842_s7] sm:$0xff]  }
 0x1a7   : > { %v2132_v31 = vld [vmem:[%s2843_s8] sm:$0xff]  }
 0x1a8   : > { %1872 = vmatprep.mubr.msk.bf16.mxu0 %vm663_vm1, %v653_v32  ;;  %1882 = vmatprep.mubr.msk.bf16.mxu1 %vm663_vm1, %v743_v33 }
 0x1a9   : > { %1873 = vmatmul.mubr.msk.bf16.vlgmr.msra.gmra.mrb[8].mxu0 %vm663_vm1, %v654_v28  ;;  %1883 = vmatmul.mubr.msk.bf16.vlgmr.msra.gmra.mrb[8].mxu1 %vm663_vm1, %v744_v29 }
 0x1aa   : > { %v1852_v34 = vpop.f32.mrb[4].mxu0  ;;  %v1868_v35 = vpop.f32.mrb[4].mxu1  ;;  %1891 = vmatpush3.bf16.msra.mxu0 %v2121_v14  ;;  %v2127_v14 = vld [vmem:[#allocation10 + $0x10] sm:$0xff]  }
 0x1ab   : > { %v531_v36 = vpop.f32.mrb[5].mxu0  ;;  %v636_v37 = vpop.f32.mrb[5].mxu1  ;;  %1900 = vmatprep.subr.bf16.mxu0 %v2122_v21 }
 0x1ac   : > { %v1853_v38 = vpop.f32.mrb[6].mxu0  ;;  %v1869_v39 = vpop.f32.mrb[6].mxu1 }
 0x1ad   : > { %v656_v40 = vpack.c.bf16 %v1853_v38, %v1852_v34  ;;  %v746_v41 = vpack.c.bf16 %v1869_v39, %v1868_v35  ;;  %v534_v42 = vpop.f32.mrb[7].mxu0  ;;  %v639_v43 = vpop.f32.mrb[7].mxu1 }
 0x1ae   : > { %v655_v44 = vpack.c.bf16 %v534_v42, %v531_v36  ;;  %v745_v45 = vpack.c.bf16 %v639_v43, %v636_v37 }
 0x1b0   : > { %1876 = vmatprep.mubr.msk.bf16.mxu0 %vm663_vm1, %v655_v44  ;;  %1886 = vmatprep.mubr.msk.bf16.mxu1 %vm663_vm1, %v745_v45 }
 0x1b1   : > { %1877 = vmatmul.mubr.msk.bf16.gmra.mrb[12].mxu0 %vm663_vm1, %v656_v40  ;;  %1887 = vmatmul.mubr.msk.bf16.gmra.mrb[12].mxu1 %vm663_vm1, %v746_v41 }
 0x1b2   : > { %1892 = vmatprep.mubr.msk.bf16.mxu0 %vm663_vm1, %v743_v33  ;;  %1918 = vmatprep.mubr.msk.bf16.mxu1 %vm468_vm0, %v2741_v46 }
 0x1b9   : > { %1893 = vmatmul.mubr.msk.bf16.vlgmr.msra.gmra.mrb[16].mxu0 %vm663_vm1, %v744_v29 }
 0x1ba   : > { %1901 = vmatpush3.bf16.msra.mxu0 %v2122_v21  ;;  %1896 = vmatprep.mubr.msk.bf16.mxu0 %vm663_vm1, %v745_v45 }
 0x1c1   : > { %1897 = vmatmul.mubr.msk.bf16.gmra.mrb[20].mxu0 %vm663_vm1, %v746_v41 }
 0x1c2   : > { %1902 = vmatprep.mubr.msk.bf16.mxu0 %vm663_vm1, %v653_v32 }
 0x1c9   : > { %1903 = vmatmul.mubr.msk.bf16.vlgmr.msra.gmra.mrb[16].mxu0 %vm663_vm1, %v654_v28 }
 0x1ca   : > { %1906 = vmatprep.mubr.msk.bf16.mxu0 %vm663_vm1, %v655_v44 }
 0x1d1   : > { %1907 = vmatmul.mubr.msk.bf16.gmra.mrb[20].mxu0 %vm663_vm1, %v656_v40 }
 0x1d2   : > { %1950 = vmatprep.mubr.msk.bf16.mxu0 %vm468_vm0, %v2125_v47 }
 0x27c   : > { %v1874_v48 = vpop.f32.mrb[8].mxu0  ;;  %v1884_v49 = vpop.f32.mrb[8].mxu1 }
 0x27d   : > { %v832_v50 = vsub.f32 %v1874_v48, %v1884_v49  ;;  %v710_v51 = vpop.f32.mrb[9].mxu0  ;;  %v799_v52 = vpop.f32.mrb[9].mxu1 }
 0x27e   : > { %v830_v53 = vsub.f32 %v710_v51, %v799_v52  ;;  %v1875_v54 = vpop.f32.mrb[10].mxu0  ;;  %v1885_v55 = vpop.f32.mrb[10].mxu1 }
 0x27f   : > { %v833_v56 = vsub.f32 %v1875_v54, %v1885_v55  ;;  %v713_v57 = vpop.f32.mrb[11].mxu0  ;;  %v802_v58 = vpop.f32.mrb[11].mxu1 }
 0x280   : > { %v831_v59 = vsub.f32 %v713_v57, %v802_v58 }
 0x281   : > { %v977_v60 = vpack.c.bf16 %v833_v56, %v832_v50 }
 0x282   : > { %v976_v61 = vpack.c.bf16 %v831_v59, %v830_v53 }
 0x284   : > { %v1878_v62 = vpop.f32.mrb[12].mxu0  ;;  %v1888_v63 = vpop.f32.mrb[12].mxu1  ;;  %1910 = vmatprep.subr.bf16.mxu1 %v976_v61  ;;  %1942 = vmatprep.subr.bf16.mxu0 %v976_v61 }
 0x285   : > { %v836_v0 = vsub.f32 %v1878_v62, %v1888_v63  ;;  %v726_v1 = vpop.f32.mrb[13].mxu0  ;;  %v815_v2 = vpop.f32.mrb[13].mxu1  ;;  %1911 = vmatpush3.bf16.msra.mxu1 %v976_v61  ;;  %1943 = vmatpush3.bf16.msra.mxu0 %v976_v61 }
 0x286   : > { %v834_v3 = vsub.f32 %v726_v1, %v815_v2  ;;  %v1879_v4 = vpop.f32.mrb[14].mxu0  ;;  %v1889_v5 = vpop.f32.mrb[14].mxu1  ;;  %1912 = vmatprep.subr.bf16.mxu1 %v977_v60  ;;  %1944 = vmatprep.subr.bf16.mxu0 %v977_v60 }
 0x287   : > { %v837_v6 = vsub.f32 %v1879_v4, %v1889_v5  ;;  %v729_v7 = vpop.f32.mrb[15].mxu0  ;;  %v818_v8 = vpop.f32.mrb[15].mxu1 }
 0x288   : > { %v835_v9 = vsub.f32 %v729_v7, %v818_v8 }
 0x289   : > { %v979_v10 = vpack.c.bf16 %v837_v6, %v836_v0  ;;  %1913 = vmatpush3.bf16.msra.mxu1 %v977_v60  ;;  %1945 = vmatpush3.bf16.msra.mxu0 %v977_v60 }
 0x28a   : > { %v978_v11 = vpack.c.bf16 %v835_v9, %v834_v3 }
 0x28c   : > { %1914 = vmatprep.subr.bf16.mxu1 %v978_v11  ;;  %1946 = vmatprep.subr.bf16.mxu0 %v978_v11 }
 0x28d   : > { %1915 = vmatpush3.bf16.msra.mxu1 %v978_v11  ;;  %1947 = vmatpush3.bf16.msra.mxu0 %v978_v11 }
 0x28e   : > { %1916 = vmatprep.subr.bf16.mxu1 %v979_v10  ;;  %1948 = vmatprep.subr.bf16.mxu0 %v979_v10 }
 0x291   : > { %1917 = vmatpush3.bf16.msra.mxu1 %v979_v10  ;;  %1949 = vmatpush3.bf16.msra.mxu0 %v979_v10 }
 0x294   : > { %1919 = vmatmul.mubr.msk.bf16.vlgmr.msra.gmra.mrb[16].mxu1 %vm468_vm0, %v2124_v12  ;;  %1951 = vmatmul.mubr.msk.bf16.vlgmr.msra.gmra.mrb[24].mxu0 %vm468_vm0, %v2126_v13 }
 0x295   : > { %1922 = vmatprep.mubr.msk.bf16.mxu1 %vm468_vm0, %v2127_v14  ;;  %1954 = vmatprep.mubr.msk.bf16.mxu0 %vm468_vm0, %v2129_v15 }
 0x29c   : > { %v1904_v18 = vpop.f32.mrb[16].mxu0  ;;  %1923 = vmatmul.mubr.msk.bf16.gmra.mrb[20].mxu1 %vm468_vm0, %v2128_v16  ;;  %1955 = vmatmul.mubr.msk.bf16.gmra.mrb[28].mxu0 %vm468_vm0, %v2130_v17 }
 0x29d   : > { %v937_v19 = vpop.f32.mrb[17].mxu0  ;;  %1934 = vmatprep.mubr.msk.bf16.mxu1 %vm468_vm0, %v2125_v47  ;;  %1966 = vmatprep.mubr.msk.bf16.mxu0 %vm468_vm0, %v2741_v46 }
 0x29e   : > { %v1905_v20 = vpop.f32.mrb[18].mxu0 }
 0x29f   : > { %v1086_v21 = vpack.c.bf16 %v1905_v20, %v1904_v18  ;;  %v940_v22 = vpop.f32.mrb[19].mxu0 }
 0x2a0   : > { %v1085_v23 = vpack.c.bf16 %v940_v22, %v937_v19 }
 0x2a2   : > { %1926 = vmatprep.subr.bf16.mxu1 %v1085_v23  ;;  %1958 = vmatprep.subr.bf16.mxu0 %v1085_v23 }
 0x2a3   : > { %1927 = vmatpush3.bf16.msra.mxu1 %v1085_v23  ;;  %1959 = vmatpush3.bf16.msra.mxu0 %v1085_v23 }
 0x2a4   : > { %v1908_v24 = vpop.f32.mrb[20].mxu0  ;;  %1928 = vmatprep.subr.bf16.mxu1 %v1086_v21  ;;  %1960 = vmatprep.subr.bf16.mxu0 %v1086_v21 }
 0x2a5   : > { %v953_v25 = vpop.f32.mrb[21].mxu0 }
 0x2a6   : > { %v1909_v26 = vpop.f32.mrb[22].mxu0 }
 0x2a7   : > { %v1088_v27 = vpack.c.bf16 %v1909_v26, %v1908_v24  ;;  %v956_v28 = vpop.f32.mrb[23].mxu0  ;;  %1929 = vmatpush3.bf16.msra.mxu1 %v1086_v21  ;;  %1961 = vmatpush3.bf16.msra.mxu0 %v1086_v21 }
 0x2a8   : > { %v1087_v29 = vpack.c.bf16 %v956_v28, %v953_v25 }
 0x2aa   : > { %1930 = vmatprep.subr.bf16.mxu1 %v1087_v29  ;;  %1962 = vmatprep.subr.bf16.mxu0 %v1087_v29 }
 0x2ab   : > { %1931 = vmatpush3.bf16.msra.mxu1 %v1087_v29  ;;  %1963 = vmatpush3.bf16.msra.mxu0 %v1087_v29 }
 0x2ac   : > { %1932 = vmatprep.subr.bf16.mxu1 %v1088_v27  ;;  %1964 = vmatprep.subr.bf16.mxu0 %v1088_v27 }
 0x2af   : > { %1933 = vmatpush3.bf16.msra.mxu1 %v1088_v27  ;;  %1965 = vmatpush3.bf16.msra.mxu0 %v1088_v27 }
 0x2b0   : > { %1974 = vmatprep.subr.bf16.mxu1 %v2131_v30 }
 0x2b2   : > { %1935 = vmatmul.mubr.msk.bf16.vlgmr.msra.gmra.mrb[24].mxu1 %vm468_vm0, %v2126_v13  ;;  %1967 = vmatmul.mubr.msk.bf16.vlgmr.msra.gmra.mrb[24].mxu0 %vm468_vm0, %v2124_v12 }
 0x2b3   : > { %1938 = vmatprep.mubr.msk.bf16.mxu1 %vm468_vm0, %v2129_v15  ;;  %1970 = vmatprep.mubr.msk.bf16.mxu0 %vm468_vm0, %v2127_v14 }
 0x2b4   : > { %1975 = vmatpush3.bf16.msra.mxu1 %v2131_v30 }
 0x2b5   : > { %1984 = vmatprep.subr.bf16.mxu1 %v2132_v31 }
 0x2ba   : > { %1939 = vmatmul.mubr.msk.bf16.gmra.mrb[28].mxu1 %vm468_vm0, %v2130_v17  ;;  %1971 = vmatmul.mubr.msk.bf16.gmra.mrb[28].mxu0 %vm468_vm0, %v2128_v16 }
 0x367   : > { %v1920_v32 = vpop.f32.mrb[16].mxu1 }
 0x368   : > { %v1046_v33 = vpop.f32.mrb[17].mxu1 }
 0x369   : > { %v1921_v34 = vpop.f32.mrb[18].mxu1 }
 0x36a   : > { %v1049_v35 = vpop.f32.mrb[19].mxu1 }
 0x36f   : > { %v1924_v36 = vpop.f32.mrb[20].mxu1 }
 0x370   : > { %v1062_v37 = vpop.f32.mrb[21].mxu1 }
 0x371   : > { %v1925_v38 = vpop.f32.mrb[22].mxu1 }
 0x372   : > { %v1065_v39 = vpop.f32.mrb[23].mxu1 }
 0x385   : > { %v1936_v40 = vpop.f32.mrb[24].mxu1  ;;  %v1968_v41 = vpop.f32.mrb[24].mxu0 }
 0x386   : > { %v1188_v42 = vsub.f32 %v1920_v32, %v1936_v40  ;;  %v1155_v43 = vpop.f32.mrb[25].mxu1  ;;  %v1293_v44 = vpop.f32.mrb[25].mxu0 }
 0x387   : > { %v1186_v45 = vsub.f32 %v1046_v33, %v1155_v43  ;;  %v1937_v46 = vpop.f32.mrb[26].mxu1  ;;  %v1969_v47 = vpop.f32.mrb[26].mxu0 }
 0x388   : > { %v1189_v48 = vsub.f32 %v1921_v34, %v1937_v46  ;;  %v1416_v49 = vpack.c.bf16 %v1969_v47, %v1968_v41  ;;  %v1158_v50 = vpop.f32.mrb[27].mxu1  ;;  %v1296_v51 = vpop.f32.mrb[27].mxu0 }
 0x389   : > { %v1187_v52 = vsub.f32 %v1049_v35, %v1158_v50  ;;  %v1415_v53 = vpack.c.bf16 %v1296_v51, %v1293_v44 }
 0x38a   : > { %v1327_v54 = vpack.c.bf16 %v1189_v48, %v1188_v42 }
 0x38b   : > { %v1326_v55 = vpack.c.bf16 %v1187_v52, %v1186_v45 }
 0x38d   : > { %v1940_v56 = vpop.f32.mrb[28].mxu1  ;;  %v1972_v57 = vpop.f32.mrb[28].mxu0  ;;  %1976 = vmatprep.mubr.msk.bf16.mxu1 %vm663_vm1, %v1326_v55 }
 0x38e   : > { %v1192_v58 = vsub.f32 %v1924_v36, %v1940_v56  ;;  %v1171_v59 = vpop.f32.mrb[29].mxu1  ;;  %v1309_v60 = vpop.f32.mrb[29].mxu0  ;;  %1977 = vmatmul.mubr.msk.bf16.vlgmr.msra.gmra.mrb[32].mxu1 %vm663_vm1, %v1327_v54 }
 0x38f   : > { %v1190_v61 = vsub.f32 %v1062_v37, %v1171_v59  ;;  %v1941_v62 = vpop.f32.mrb[30].mxu1  ;;  %v1973_v63 = vpop.f32.mrb[30].mxu0  ;;  %1985 = vmatpush3.bf16.msra.mxu1 %v2132_v31 }
 0x390   : > { %v1193_v0 = vsub.f32 %v1925_v38, %v1941_v62  ;;  %v1418_v1 = vpack.c.bf16 %v1973_v63, %v1972_v57  ;;  %v1174_v2 = vpop.f32.mrb[31].mxu1  ;;  %v1312_v3 = vpop.f32.mrb[31].mxu0 }
 0x391   : > { %v1191_v4 = vsub.f32 %v1065_v39, %v1174_v2  ;;  %v1417_v5 = vpack.c.bf16 %v1312_v3, %v1309_v60 }
 0x392   : > { %v1329_v6 = vpack.c.bf16 %v1193_v0, %v1192_v58 }
 0x393   : > { %v1328_v7 = vpack.c.bf16 %v1191_v4, %v1190_v61 }
 0x395   : > { %1980 = vmatprep.mubr.msk.bf16.mxu1 %vm663_vm1, %v1328_v7 }
 0x396   : > { %1981 = vmatmul.mubr.msk.bf16.gmra.mrb[36].mxu1 %vm663_vm1, %v1329_v6 }
 0x397   : > { %1986 = vmatprep.mubr.msk.bf16.mxu1 %vm663_vm1, %v1415_v53 }
 0x39e   : > { %1987 = vmatmul.mubr.msk.bf16.vlgmr.msra.gmra.mrb[40].mxu1 %vm663_vm1, %v1416_v49 }
 0x39f   : > { %1990 = vmatprep.mubr.msk.bf16.mxu1 %vm663_vm1, %v1417_v5 }
 0x3a6   : > { %1991 = vmatmul.mubr.msk.bf16.gmra.mrb[44].mxu1 %vm663_vm1, %v1418_v1 }
 0x461   : > { %v1978_v8 = vpop.f32.mrb[32].mxu1 }
 0x462   : > { %v1382_v9 = vpop.f32.mrb[33].mxu1 }
 0x463   : > { %v1979_v10 = vpop.f32.mrb[34].mxu1 }
 0x464   : > { %v1385_v11 = vpop.f32.mrb[35].mxu1 }
 0x469   : > { %v1982_v12 = vpop.f32.mrb[36].mxu1 }
 0x46a   : > { %v1398_v13 = vpop.f32.mrb[37].mxu1 }
 0x46b   : > { %v1983_v14 = vpop.f32.mrb[38].mxu1 }
 0x46c   : > { %v1401_v15 = vpop.f32.mrb[39].mxu1 }
 0x471   : > { %v1988_v16 = vpop.f32.mrb[40].mxu1 }
 0x472   : > { %v1504_v17 = vsub.f32 %v1978_v8, %v1988_v16  ;;  %v1471_v18 = vpop.f32.mrb[41].mxu1 }
 0x473   : > { %v1502_v19 = vsub.f32 %v1382_v9, %v1471_v18  ;;  %v1989_v20 = vpop.f32.mrb[42].mxu1 }
 0x474   : > { %v1512_v21 = vand.u32 2147483647, %v1504_v17  ;;  %v1505_v22 = vsub.f32 %v1979_v10, %v1989_v20  ;;  %v1474_v23 = vpop.f32.mrb[43].mxu1 }
 0x475   : > { %v1510_v24 = vand.u32 2147483647, %v1502_v19  ;;  %v1503_v25 = vsub.f32 %v1385_v11, %v1474_v23 }
 0x476   : > { %1520 = vst.msk [vmem:[%s424_s9 + $0x10] sm:$0xff] %vm663_vm1, %v1512_v21  ;;  %v1513_v26 = vand.u32 2147483647, %v1505_v22 }
 0x477   : > { %1518 = vst.msk [vmem:[%s424_s9] sm:$0xff] %vm663_vm1, %v1510_v24  ;;  %v1511_v27 = vand.u32 2147483647, %v1503_v25 }
 0x478   : > { %1521 = vst.msk [vmem:[%s424_s9 + $0x18] sm:$0xff] %vm663_vm1, %v1513_v26 }
 0x479   : > { %1519 = vst.msk [vmem:[%s424_s9 + $0x8] sm:$0xff] %vm663_vm1, %v1511_v27  ;;  %v1992_v28 = vpop.f32.mrb[44].mxu1 }
 0x47a   : > { %v1508_v29 = vsub.f32 %v1982_v12, %v1992_v28  ;;  %v1487_v30 = vpop.f32.mrb[45].mxu1 }
 0x47b   : > { %v1506_v31 = vsub.f32 %v1398_v13, %v1487_v30  ;;  %v1993_v32 = vpop.f32.mrb[46].mxu1 }
 0x47c   : > { %v1516_v33 = vand.u32 2147483647, %v1508_v29  ;;  %v1509_v34 = vsub.f32 %v1983_v14, %v1993_v32  ;;  %v1490_v35 = vpop.f32.mrb[47].mxu1 }
 0x47d   : > { %v1514_v36 = vand.u32 2147483647, %v1506_v31  ;;  %v1507_v37 = vsub.f32 %v1401_v15, %v1490_v35 }
 0x47e   : > { %1524 = vst.msk [vmem:[%s424_s9 + $0x30] sm:$0xff] %vm663_vm1, %v1516_v33  ;;  %v1517_v38 = vand.u32 2147483647, %v1509_v34 }
 0x47f   : > { %1522 = vst.msk [vmem:[%s424_s9 + $0x20] sm:$0xff] %vm663_vm1, %v1514_v36  ;;  %v1515_v39 = vand.u32 2147483647, %v1507_v37 }
 0x480   : > { %1525 = vst.msk [vmem:[%s424_s9 + $0x38] sm:$0xff] %vm663_vm1, %v1517_v38 }
 0x481   : > { %1523 = vst.msk [vmem:[%s424_s9 + $0x28] sm:$0xff] %vm663_vm1, %v1515_v39 }
 0x482   : > { %2316 = shalt.err (!%p2313_p8)
}
 0x483   : > { %s2317_s21 = scalar_lea.hbm %s2786_s14, 1024  ;;  %s2321_s26 = scalar_lea.hbm %s2867_s20, 2048 }
 0x484   : > { %p2318_p6 = scmp.ne.s32.totalorder %s2786_s14, %s2317_s21  ;;  %p2322_p3 = scmp.lt.u32.totalorder %s2786_s14, %s2867_s20 }
 0x485   : > { %p2323_p5 = scmp.lt.u32.totalorder %s2321_s26, %s2317_s21  ;;  %p2325_p7 = scmp.lt.u32.totalorder %s2317_s21, %s2786_s14 }
 0x486   : > { %p2319_p10 = pnand %p2318_p6, %p2868_p4 }
 0x487   : > { %p2324_p9 = por %p2323_p5, %p2322_p3 }
 0x488   : > { %p2320_p11 = pneg %p2319_p10 }
 0x489   : > { %p2326_p12 = por %p2325_p7, %p2324_p9 }
 0x48b   : > { %p2327_p1 = pnand %p2326_p12, %p2320_p11 }
 0x48d   : > { %2330 = shalt.err (!%p2327_p1)
}
 0x48e   : > { %s2394_s16 = smov 128   ;;  %s2395_s24 = smov 8  }
 0x48f   : > { %2032 = dma.vmem_to_hbm [thread:$0]  (%p2868_p4), %s2788_s1, 1024, %s2786_s14, %s1527_s15, %s2394_s16, %s2394_s16, %s2395_s24  }
 0x490 PF: > { %s1556_s18 = sand.u32 1, %s2369_s30   ;;  %p2869_p13 = scmp.ne.s32.totalorder %s2858_s25, 0 }
 0x491   : > { %p2870_p0 = scmp.ge.s32.totalorder %s2381_s12, 2  ;;  %s1557_s23 = scalar_lea.sflag [#allocation4], %s1556_s18 }
 0x493   : > { %p2055_p2 = pnand %p2870_p0, %p2869_p13 }
 0x495   : > { %2364 = dma.done.wait (!%p2055_p2), %s1557_s23, 1024  }
 0x496   : > { %2366 = vsyncadd (!%p2055_p2), %s1557_s23, 4294966272  ;;  %p25_p8 = scmp.ge.s32.totalorder %s2619_s27, 4   ;;  %s2871_s30 = smov %s2373_s10 }
 0x497   : > { %s2872_s10 = smov %s2377_s11  ;;  %s2873_s11 = smov %s2631_s22 }
 0x498   : > { %s2874_s12 = smov %s2619_s27  ;;  %27 = sbr.rel (!%p25_p8) target bundleno = 11 (0xb), region = 121 }
 0x49f   :  { %1562 = vsyncpa [#allocation3], 1 }
 0x4a0   :  { %1564 = vsyncpa [#allocation3 + $0x1], 1 }
 0x4a1   :  { %1565 = vsyncpa [#allocation6], 1 }
 0x4a2   :  { %1566 = vsyncpa [#allocation9], 1 }
 0x4a3   :  { %1567 = vsyncpa [#allocation12], 1 }
 0x4a4   :  { %1568 = vsyncpa [#allocation4], 1 }
 0x4a5   :  { %1570 = vsyncpa [#allocation4 + $0x1], 1 }

</bundles_post_ra>
